<compile_context>
chip_gen: v6e
topology: v6e:2x2x1
jax: 0.10.0
libtpu: 0.0.40
codegen_flags: <defaults>
</compile_context>

<pallas_src>
import functools

import jax
import jax.numpy as jnp
from jax.experimental import pallas as pl
from jax.experimental.pallas import tpu as pltpu


def _round_up(v, m):
    return ((v + m - 1) // m) * m


# ---------------------------------------------------------------------------
# Pallas kernel: fused im2col (scratch) + shared conv (one MXU dot) + ReLU + |diff|
# ---------------------------------------------------------------------------
def _siam_conv_kernel(x_ref, w_ref, o_ref, patch_ref, *, tap_offs, lout, c):
    # x_ref     : (1, 2, C, Lin)  one row band of the zero-padded image (+2 halo
    #                             rows), flattened row-major into the lane dim;
    #                             x_ref[0, 0] = branch 1, x_ref[0, 1] = branch 2.
    # w_ref     : (F, 9C)         shared 3x3 weights, tap-major / channel-minor.
    # o_ref     : (1, F, Lout)    |relu(conv(x1)) - relu(conv(x2))| for this band.
    # patch_ref : (9C, 2*Lout)    persistent VMEM scratch: im2col patches of BOTH
    #                             branches stacked along lanes (no concatenate).
    for bi in range(2):
        xb = x_ref[0, bi]                        # (C, Lin) — one load per branch
        lane0 = bi * lout
        for t, off in enumerate(tap_offs):
            # Fused im2col: tap (dh, dw) is a static lane-offset slice of the
            # flattened padded band (offset = dh*(W+2) + dw), written straight
            # into its final row block of the patch scratch.
            patch_ref[t * c:(t + 1) * c, lane0:lane0 + lout] = xb[:, off:off + lout]

    # Single MXU dot covers all 9 taps and BOTH branches: (F, 9C) @ (9C, 2*Lout).
    r = jnp.dot(w_ref[...], patch_ref[...], preferred_element_type=jnp.float32)

    f1 = jnp.maximum(r[:, :lout], 0.0)           # branch-1 features (f32)
    f2 = jnp.maximum(r[:, lout:], 0.0)           # branch-2 features (f32)
    o_ref[0] = jnp.abs(f1 - f2).astype(o_ref.dtype)


def base_siam_net_forward(x, weight, *, rows_per_band=None,
                          compute_dtype=jnp.bfloat16):
    """x: [N, 2C, H, W] NCHW.  weight: [F, C, 3, 3] (shared between branches).

    Returns [N, F, H, W] = |relu(conv(x1, W)) - relu(conv(x2, W))|.
    """
    n, c2, h, w = x.shape
    assert c2 % 2 == 0, "split_images requires an even channel count"
    c = c2 // 2
    f, cw, kh, kw_ = weight.shape
    assert cw == c and kh == 3 and kw_ == 3

    wp = w + 2                                   # padded row width (conv pad = 1)
    if rows_per_band is None:
        # Target a few-thousand-lane band: amortizes the ~0.35us/step grid
        # overhead while keeping per-step VMEM bounded (independent of H).
        rows_per_band = max(1, 4096 // wp)
    rpb = int(max(1, min(rows_per_band, h)))
    nb = -(-h // rpb)                            # number of row bands
    hb = nb * rpb                                # rows covered by the bands

    lout = _round_up(rpb * wp, 128)              # lane-dense output block width
    max_off = 2 * wp + 2                         # largest 3x3 tap offset
    lin = _round_up(max((rpb + 2) * wp, lout + max_off), 128)

    # ---- one gather builds: zero pad + band split + 2-row halo + lane pad ----
    # band j, local lane l -> padded row pr = j*rpb + l//wp, padded col pc = l%wp
    #                      -> source pixel (pr - 1, pc - 1); zero outside image.
    j_idx = jnp.arange(nb, dtype=jnp.int32)[:, None]
    l_idx = jnp.arange(lin, dtype=jnp.int32)[None, :]
    src_r = j_idx * rpb + l_idx // wp - 1
    src_c = l_idx % wp - 1
    valid = ((src_r >= 0) & (src_r < h) & (src_c >= 0) & (src_c < w)
             & (l_idx < (rpb + 2) * wp))
    flat_idx = jnp.where(valid, src_r * w + src_c, 0).reshape(-1)   # [nb*Lin]
    mask = valid.reshape(-1)

    x_flat = x.reshape(n, 2, c, h * w)
    xb = jnp.take(x_flat, flat_idx, axis=3)                         # [N,2,C,nb*Lin]
    xb = jnp.where(mask[None, None, None, :], xb, 0).astype(compute_dtype)

    # ---- shared weight: (F, 9C), tap-major / channel-minor ----
    w_mat = (jnp.transpose(weight, (0, 2, 3, 1))                    # [F, 3, 3, C]
             .reshape(f, 9 * c).astype(compute_dtype))

    tap_offs = tuple(dh * wp + dw for dh in range(3) for dw in range(3))
    kernel = functools.partial(_siam_conv_kernel, tap_offs=tap_offs,
                               lout=lout, c=c)

    # VMEM budget from the actual chip (~48 MiB on v7x, ~96 MiB on v5e/v6e).
    try:
        vmem_cap = pltpu.get_tpu_info().vmem_capacity_bytes
    except Exception:
        vmem_cap = 64 * 1024 * 1024
    vmem_limit = int(min(vmem_cap * 3 // 4, 100 * 1024 * 1024))

    out = pl.pallas_call(
        kernel,
        out_shape=jax.ShapeDtypeStruct((n, f, nb * lout), jnp.float32),
        grid_spec=pltpu.PrefetchScalarGridSpec(
            num_scalar_prefetch=0,
            grid=(n, nb),                        # batch x row-bands, all parallel
            in_specs=[
                pl.BlockSpec((1, 2, c, lin), lambda i, j: (i, 0, 0, j)),
                # Weight stays resident (constant index map); a few KiB after the
                # bf16 + halved-K changes, so default double-buffering is free.
                pl.BlockSpec((f, 9 * c), lambda i, j: (0, 0)),
            ],
            out_specs=pl.BlockSpec((1, f, lout), lambda i, j: (i, 0, j)),
            scratch_shapes=[pltpu.VMEM((9 * c, 2 * lout), compute_dtype)],
        ),
        compiler_params=pltpu.CompilerParams(
            dimension_semantics=("parallel", "parallel"),
            vmem_limit_bytes=vmem_limit,
        ),
    )(xb, w_mat)

    # Output is already N, F, (band, row, padded-col) ordered: strip the padded
    # columns and the lane-rounding tail; no transpose pass needed.
    out = out.reshape(n, f, nb, lout)[:, :, :, :rpb * wp]
    out = out.reshape(n, f, nb, rpb, wp)[:, :, :, :, :w]
    return out.reshape(n, f, hb, w)[:, :, :h, :]


# ---------------------------------------------------------------------------
# Pure-JAX reference (for sanity checking the kernel)
# ---------------------------------------------------------------------------
def _reference(x, weight):
    n, c2, h, w = x.shape
    c = c2 // 2
    x1, x2 = x[:, :c], x[:, c:]
    dn = jax.lax.conv_dimension_numbers(x1.shape, weight.shape,
                                        ("NCHW", "OIHW", "NCHW"))
    conv = lambda a: jax.lax.conv_general_dilated(
        a, weight, (1, 1), "SAME", dimension_numbers=dn)
    f1 = jnp.maximum(conv(x1), 0.0)
    f2 = jnp.maximum(conv(x2), 0.0)
    return jnp.abs(f1 - f2)


if __name__ == "__main__":
    key = jax.random.PRNGKey(0)
    kx, kw = jax.random.split(key)

    # Small shapes: batch=2, per-branch channels=4 (input has 2*4=8), spatial=16
    N, C, H, W, F, K = 2, 4, 16, 16, 8, 3
    x = jax.random.normal(kx, (N, 2 * C, H, W), dtype=jnp.float32)

    # Deterministic kaiming-normal init for the shared Conv2d (fan_in = C*K*K)
    fan_in = C * K * K
    std = (2.0 / fan_in) ** 0.5
    weight = std * jax.random.normal(kw, (F, C, K, K), dtype=jnp.float32)

    # rows_per_band=8 -> 2 row bands, so the banded path is actually exercised.
    out = jax.block_until_ready(base_siam_net_forward(x, weight, rows_per_band=8))

    # Reference on bf16-rounded inputs: the kernel quantizes inputs/weights to
    # bf16 but accumulates in f32, so this comparison stays tight.
    xq = x.astype(jnp.bfloat16).astype(jnp.float32)
    wq = weight.astype(jnp.bfloat16).astype(jnp.float32)
    ref = jax.block_until_ready(_reference(xq, wq))

    assert out.shape == (N, F, H, W)
    assert jnp.allclose(out, ref, atol=2e-2, rtol=2e-2), "mismatch vs reference"

    print("KERNEL_OK")
</pallas_src>

<mosaic_0001>
module attributes {stable_mosaic.version = 11 : i64} {
  func.func @_siam_conv_kernel(%arg0: i32, %arg1: i32, %arg2: memref<1x2x4x384xbf16, #tpu.memory_space<vmem>>, %arg3: memref<8x36xbf16, #tpu.memory_space<vmem>>, %arg4: memref<1x8x256xf32, #tpu.memory_space<vmem>>, %arg5: memref<36x512xbf16, #tpu.memory_space<vmem>>) attributes {dimension_semantics = [#tpu.dimension_semantics<parallel>, #tpu.dimension_semantics<parallel>], iteration_bounds = array<i64: 2, 2>, scalar_prefetch = 0 : i64, scratch_operands = 1 : i64, tpu.core_type = #tpu.core_type<tc>, window_params = [{transform_indices = @transform_0, window_bounds = array<i64: 1, 2, 4, 384>}, {pipeline_mode = #tpu.pipeline_mode<synchronous>, transform_indices = @transform_1, window_bounds = array<i64: 8, 36>}, {transform_indices = @transform_2, window_bounds = array<i64: 1, 8, 256>}]} {
    %c0 = arith.constant 0 : index
    %c0_0 = arith.constant 0 : index
    %c0_1 = arith.constant 0 : index
    %c0_2 = arith.constant 0 : index
    %0 = vector.load %arg2[%c0, %c0_0, %c0_1, %c0_2] : memref<1x2x4x384xbf16, #tpu.memory_space<vmem>>, vector<1x1x4x384xbf16>
    %1 = vector.shape_cast %0 : vector<1x1x4x384xbf16> to vector<4x384xbf16>
    %2 = vector.extract_strided_slice %1 {offsets = [0, 0], sizes = [4, 256], strides = [1, 1]} : vector<4x384xbf16> to vector<4x256xbf16>
    %c0_3 = arith.constant 0 : index
    %c0_4 = arith.constant 0 : index
    %3 = vector.load %arg5[%c0_3, %c0_4] : memref<36x512xbf16, #tpu.memory_space<vmem>>, vector<4x256xbf16>
    tpu.vector_store %arg5[%c0_3, %c0_4], %2 {strides = array<i32>} : memref<36x512xbf16, #tpu.memory_space<vmem>>, vector<4x256xbf16>,
    %4 = vector.extract_strided_slice %1 {offsets = [0, 1], sizes = [4, 256], strides = [1, 1]} : vector<4x384xbf16> to vector<4x256xbf16>
    %c4 = arith.constant 4 : index
    %c0_5 = arith.constant 0 : index
    %5 = vector.load %arg5[%c4, %c0_5] : memref<36x512xbf16, #tpu.memory_space<vmem>>, vector<4x256xbf16>
    tpu.vector_store %arg5[%c4, %c0_5], %4 {strides = array<i32>} : memref<36x512xbf16, #tpu.memory_space<vmem>>, vector<4x256xbf16>,
    %6 = vector.extract_strided_slice %1 {offsets = [0, 2], sizes = [4, 256], strides = [1, 1]} : vector<4x384xbf16> to vector<4x256xbf16>
    %c8 = arith.constant 8 : index
    %c0_6 = arith.constant 0 : index
    %7 = vector.load %arg5[%c8, %c0_6] : memref<36x512xbf16, #tpu.memory_space<vmem>>, vector<4x256xbf16>
    tpu.vector_store %arg5[%c8, %c0_6], %6 {strides = array<i32>} : memref<36x512xbf16, #tpu.memory_space<vmem>>, vector<4x256xbf16>,
    %8 = vector.extract_strided_slice %1 {offsets = [0, 18], sizes = [4, 256], strides = [1, 1]} : vector<4x384xbf16> to vector<4x256xbf16>
    %c12 = arith.constant 12 : index
    %c0_7 = arith.constant 0 : index
    %9 = vector.load %arg5[%c12, %c0_7] : memref<36x512xbf16, #tpu.memory_space<vmem>>, vector<4x256xbf16>
    tpu.vector_store %arg5[%c12, %c0_7], %8 {strides = array<i32>} : memref<36x512xbf16, #tpu.memory_space<vmem>>, vector<4x256xbf16>,
    %10 = vector.extract_strided_slice %1 {offsets = [0, 19], sizes = [4, 256], strides = [1, 1]} : vector<4x384xbf16> to vector<4x256xbf16>
    %c16 = arith.constant 16 : index
    %c0_8 = arith.constant 0 : index
    %11 = vector.load %arg5[%c16, %c0_8] : memref<36x512xbf16, #tpu.memory_space<vmem>>, vector<4x256xbf16>
    tpu.vector_store %arg5[%c16, %c0_8], %10 {strides = array<i32>} : memref<36x512xbf16, #tpu.memory_space<vmem>>, vector<4x256xbf16>,
    %12 = vector.extract_strided_slice %1 {offsets = [0, 20], sizes = [4, 256], strides = [1, 1]} : vector<4x384xbf16> to vector<4x256xbf16>
    %c20 = arith.constant 20 : index
    %c0_9 = arith.constant 0 : index
    %13 = vector.load %arg5[%c20, %c0_9] : memref<36x512xbf16, #tpu.memory_space<vmem>>, vector<4x256xbf16>
    tpu.vector_store %arg5[%c20, %c0_9], %12 {strides = array<i32>} : memref<36x512xbf16, #tpu.memory_space<vmem>>, vector<4x256xbf16>,
    %14 = vector.extract_strided_slice %1 {offsets = [0, 36], sizes = [4, 256], strides = [1, 1]} : vector<4x384xbf16> to vector<4x256xbf16>
    %c24 = arith.constant 24 : index
    %c0_10 = arith.constant 0 : index
    %15 = vector.load %arg5[%c24, %c0_10] : memref<36x512xbf16, #tpu.memory_space<vmem>>, vector<4x256xbf16>
    tpu.vector_store %arg5[%c24, %c0_10], %14 {strides = array<i32>} : memref<36x512xbf16, #tpu.memory_space<vmem>>, vector<4x256xbf16>,
    %16 = vector.extract_strided_slice %1 {offsets = [0, 37], sizes = [4, 256], strides = [1, 1]} : vector<4x384xbf16> to vector<4x256xbf16>
    %c28 = arith.constant 28 : index
    %c0_11 = arith.constant 0 : index
    %17 = vector.load %arg5[%c28, %c0_11] : memref<36x512xbf16, #tpu.memory_space<vmem>>, vector<4x256xbf16>
    tpu.vector_store %arg5[%c28, %c0_11], %16 {strides = array<i32>} : memref<36x512xbf16, #tpu.memory_space<vmem>>, vector<4x256xbf16>,
    %18 = vector.extract_strided_slice %1 {offsets = [0, 38], sizes = [4, 256], strides = [1, 1]} : vector<4x384xbf16> to vector<4x256xbf16>
    %c32 = arith.constant 32 : index
    %c0_12 = arith.constant 0 : index
    %19 = vector.load %arg5[%c32, %c0_12] : memref<36x512xbf16, #tpu.memory_space<vmem>>, vector<4x256xbf16>
    tpu.vector_store %arg5[%c32, %c0_12], %18 {strides = array<i32>} : memref<36x512xbf16, #tpu.memory_space<vmem>>, vector<4x256xbf16>,
    %c0_13 = arith.constant 0 : index
    %c1 = arith.constant 1 : index
    %c0_14 = arith.constant 0 : index
    %c0_15 = arith.constant 0 : index
    %20 = vector.load %arg2[%c0_13, %c1, %c0_14, %c0_15] : memref<1x2x4x384xbf16, #tpu.memory_space<vmem>>, vector<1x1x4x384xbf16>
    %21 = vector.shape_cast %20 : vector<1x1x4x384xbf16> to vector<4x384xbf16>
    %22 = vector.extract_strided_slice %21 {offsets = [0, 0], sizes = [4, 256], strides = [1, 1]} : vector<4x384xbf16> to vector<4x256xbf16>
    %c0_16 = arith.constant 0 : index
    %c256 = arith.constant 256 : index
    %23 = vector.load %arg5[%c0_16, %c256] : memref<36x512xbf16, #tpu.memory_space<vmem>>, vector<4x256xbf16>
    tpu.vector_store %arg5[%c0_16, %c256], %22 {strides = array<i32>} : memref<36x512xbf16, #tpu.memory_space<vmem>>, vector<4x256xbf16>,
    %24 = vector.extract_strided_slice %21 {offsets = [0, 1], sizes = [4, 256], strides = [1, 1]} : vector<4x384xbf16> to vector<4x256xbf16>
    %c4_17 = arith.constant 4 : index
    %c256_18 = arith.constant 256 : index
    %25 = vector.load %arg5[%c4_17, %c256_18] : memref<36x512xbf16, #tpu.memory_space<vmem>>, vector<4x256xbf16>
    tpu.vector_store %arg5[%c4_17, %c256_18], %24 {strides = array<i32>} : memref<36x512xbf16, #tpu.memory_space<vmem>>, vector<4x256xbf16>,
    %26 = vector.extract_strided_slice %21 {offsets = [0, 2], sizes = [4, 256], strides = [1, 1]} : vector<4x384xbf16> to vector<4x256xbf16>
    %c8_19 = arith.constant 8 : index
    %c256_20 = arith.constant 256 : index
    %27 = vector.load %arg5[%c8_19, %c256_20] : memref<36x512xbf16, #tpu.memory_space<vmem>>, vector<4x256xbf16>
    tpu.vector_store %arg5[%c8_19, %c256_20], %26 {strides = array<i32>} : memref<36x512xbf16, #tpu.memory_space<vmem>>, vector<4x256xbf16>,
    %28 = vector.extract_strided_slice %21 {offsets = [0, 18], sizes = [4, 256], strides = [1, 1]} : vector<4x384xbf16> to vector<4x256xbf16>
    %c12_21 = arith.constant 12 : index
    %c256_22 = arith.constant 256 : index
    %29 = vector.load %arg5[%c12_21, %c256_22] : memref<36x512xbf16, #tpu.memory_space<vmem>>, vector<4x256xbf16>
    tpu.vector_store %arg5[%c12_21, %c256_22], %28 {strides = array<i32>} : memref<36x512xbf16, #tpu.memory_space<vmem>>, vector<4x256xbf16>,
    %30 = vector.extract_strided_slice %21 {offsets = [0, 19], sizes = [4, 256], strides = [1, 1]} : vector<4x384xbf16> to vector<4x256xbf16>
    %c16_23 = arith.constant 16 : index
    %c256_24 = arith.constant 256 : index
    %31 = vector.load %arg5[%c16_23, %c256_24] : memref<36x512xbf16, #tpu.memory_space<vmem>>, vector<4x256xbf16>
    tpu.vector_store %arg5[%c16_23, %c256_24], %30 {strides = array<i32>} : memref<36x512xbf16, #tpu.memory_space<vmem>>, vector<4x256xbf16>,
    %32 = vector.extract_strided_slice %21 {offsets = [0, 20], sizes = [4, 256], strides = [1, 1]} : vector<4x384xbf16> to vector<4x256xbf16>
    %c20_25 = arith.constant 20 : index
    %c256_26 = arith.constant 256 : index
    %33 = vector.load %arg5[%c20_25, %c256_26] : memref<36x512xbf16, #tpu.memory_space<vmem>>, vector<4x256xbf16>
    tpu.vector_store %arg5[%c20_25, %c256_26], %32 {strides = array<i32>} : memref<36x512xbf16, #tpu.memory_space<vmem>>, vector<4x256xbf16>,
    %34 = vector.extract_strided_slice %21 {offsets = [0, 36], sizes = [4, 256], strides = [1, 1]} : vector<4x384xbf16> to vector<4x256xbf16>
    %c24_27 = arith.constant 24 : index
    %c256_28 = arith.constant 256 : index
    %35 = vector.load %arg5[%c24_27, %c256_28] : memref<36x512xbf16, #tpu.memory_space<vmem>>, vector<4x256xbf16>
    tpu.vector_store %arg5[%c24_27, %c256_28], %34 {strides = array<i32>} : memref<36x512xbf16, #tpu.memory_space<vmem>>, vector<4x256xbf16>,
    %36 = vector.extract_strided_slice %21 {offsets = [0, 37], sizes = [4, 256], strides = [1, 1]} : vector<4x384xbf16> to vector<4x256xbf16>
    %c28_29 = arith.constant 28 : index
    %c256_30 = arith.constant 256 : index
    %37 = vector.load %arg5[%c28_29, %c256_30] : memref<36x512xbf16, #tpu.memory_space<vmem>>, vector<4x256xbf16>
    tpu.vector_store %arg5[%c28_29, %c256_30], %36 {strides = array<i32>} : memref<36x512xbf16, #tpu.memory_space<vmem>>, vector<4x256xbf16>,
    %38 = vector.extract_strided_slice %21 {offsets = [0, 38], sizes = [4, 256], strides = [1, 1]} : vector<4x384xbf16> to vector<4x256xbf16>
    %c32_31 = arith.constant 32 : index
    %c256_32 = arith.constant 256 : index
    %39 = vector.load %arg5[%c32_31, %c256_32] : memref<36x512xbf16, #tpu.memory_space<vmem>>, vector<4x256xbf16>
    tpu.vector_store %arg5[%c32_31, %c256_32], %38 {strides = array<i32>} : memref<36x512xbf16, #tpu.memory_space<vmem>>, vector<4x256xbf16>,
    %c0_33 = arith.constant 0 : index
    %c0_34 = arith.constant 0 : index
    %40 = vector.load %arg3[%c0_33, %c0_34] : memref<8x36xbf16, #tpu.memory_space<vmem>>, vector<8x36xbf16>
    %c0_35 = arith.constant 0 : index
    %c0_36 = arith.constant 0 : index
    %41 = vector.load %arg5[%c0_35, %c0_36] : memref<36x512xbf16, #tpu.memory_space<vmem>>, vector<36x512xbf16>
    %cst = arith.constant dense<0.000000e+00> : vector<8x512xf32>
    %42 = tpu.matmul %40, %41, %cst {dimension_numbers = #tpu.dot_dimension_numbers<[1], [0], [0], [1], [0, 0, 1, 1], [], []>} : vector<8x36xbf16>, vector<36x512xbf16>, vector<8x512xf32> -> vector<8x512xf32>
    %43 = vector.extract_strided_slice %42 {offsets = [0, 0], sizes = [8, 256], strides = [1, 1]} : vector<8x512xf32> to vector<8x256xf32>
    %cst_37 = arith.constant 0.000000e+00 : f32
    %44 = vector.broadcast %cst_37 : f32 to vector<8x256xf32>
    %45 = arith.maximumf %43, %44 : vector<8x256xf32>
    %46 = vector.extract_strided_slice %42 {offsets = [0, 256], sizes = [8, 256], strides = [1, 1]} : vector<8x512xf32> to vector<8x256xf32>
    %cst_38 = arith.constant 0.000000e+00 : f32
    %47 = vector.broadcast %cst_38 : f32 to vector<8x256xf32>
    %48 = arith.maximumf %46, %47 : vector<8x256xf32>
    %49 = arith.subf %45, %48 : vector<8x256xf32>
    %50 = math.absf %49 : vector<8x256xf32>
    %c0_39 = arith.constant 0 : index
    %c0_40 = arith.constant 0 : index
    %c0_41 = arith.constant 0 : index
    %51 = vector.load %arg4[%c0_39, %c0_40, %c0_41] : memref<1x8x256xf32, #tpu.memory_space<vmem>>, vector<1x8x256xf32>
    %52 = vector.shape_cast %51 : vector<1x8x256xf32> to vector<8x256xf32>
    %53 = vector.shape_cast %50 : vector<8x256xf32> to vector<1x8x256xf32>
    tpu.vector_store %arg4[%c0_39, %c0_40, %c0_41], %53 {strides = array<i32>} : memref<1x8x256xf32, #tpu.memory_space<vmem>>, vector<1x8x256xf32>,
    return
  }
  func.func @transform_0(%arg0: i32, %arg1: i32) -> (i32, i32, i32, i32) {
    %c0_i32 = arith.constant 0 : i32
    %c0_i32_0 = arith.constant 0 : i32
    %c0_i32_1 = arith.constant 0 : i32
    return %arg0, %c0_i32, %c0_i32_0, %arg1 : i32, i32, i32, i32
  }
  func.func @transform_1(%arg0: i32, %arg1: i32) -> (i32, i32) {
    %c0_i32 = arith.constant 0 : i32
    %c0_i32_0 = arith.constant 0 : i32
    %c0_i32_1 = arith.constant 0 : i32
    return %c0_i32, %c0_i32_0 : i32, i32
  }
  func.func @transform_2(%arg0: i32, %arg1: i32) -> (i32, i32, i32) {
    %c0_i32 = arith.constant 0 : i32
    %c0_i32_0 = arith.constant 0 : i32
    return %arg0, %c0_i32, %arg1 : i32, i32, i32
  }
}

</mosaic_0001>

<bundles_post_ra>
// kernel: tpu_custom_call.1
= control target key start
LH: loop header
LB: loop body
LE: loop exit
PB: predicated region body
PF: predicated region fallthrough
CT: control target
= control target key end

     0   :  { %s1254_s0 = inlined_call_operand.hbm [shape: bf16[2,2,4,768], index: 0, kind: input, shape index: {}]   ;;  %s1255_s1 = inlined_call_operand.hbm [shape: bf16[8,36], index: 1, kind: input, shape index: {}]   ;;  %s1256_s2 = inlined_call_operand.hbm [shape: f32[2,8,512], index: 2, kind: output, shape index: {}]  }
   0x1   :  { %1266 = sst [smem:[#allocation17_spill]] %s1255_s1 }
   0x2   :  { %7 = vsyncpa [#allocation4], 0 }
   0x3   :  { %9 = vsyncpa [#allocation4 + $0x1], 0 }
   0x4   :  { %10 = vsyncpa [#allocation7], 0 }
   0x5   :  { %11 = vsyncpa [#allocation5], 0 }
   0x6   :  { %13 = vsyncpa [#allocation5 + $0x1], 0  ;;  %s1046_s9 = smov 0   ;;  %s1048_s10 = smov 0  }
   0x7   :  { %s1050_s11 = smov 0   ;;  %s1052_s12 = smov 0  }
   0x8   :  { %s1054_s13 = smov 0   ;;  %s1056_s14 = smov 0  }
   0x9   :  { %s1058_s15 = smov 0   ;;  %s1060_s16 = smov 0  }
   0xa LB: > { %1267 = sst [smem:[#allocation12_spill]] %s985_s9  ;;  %s704_s17 = sadd.s32 4294967295, %s1013_s16   ;;  %s1013_s16 = sphi %s1060_s16, %s19_s16   ;;  %s1009_s15 = sphi %s1058_s15, %s1295_s15   ;;  %s1005_s14 = sphi %s1056_s14, %s1294_s14   ;;  %s1001_s13 = sphi %s1054_s13, %s1293_s13   ;;  %s997_s12 = sphi %s1052_s12, %s1288_s12   ;;  %s993_s11 = sphi %s1050_s11, %s1292_s11   ;;  %s989_s10 = sphi %s1048_s10, %s1291_s10   ;;  %s985_s9 = sphi %s1046_s9, %s1290_s9  }
   0xb   : > { %1268 = sst [smem:[#allocation13_spill]] %s1005_s14  ;;  %s705_s18 = sadd.s32 4294967294, %s1013_s16  }
   0xc   : > { %1269 = sst [smem:[#allocation14_spill]] %s1013_s16  ;;  %p47_p0 = scmp.ne.s32.totalorder %s993_s11, %s989_s10 }
   0xd   : > { %p48_p1 = scmp.eq.s32.totalorder %s1013_s16, 0  ;;  %p53_p2 = scmp.ne.s32.totalorder %s989_s10, %s985_s9 }
   0xe   : > { %p1094_p3 = scmp.eq.s32.totalorder %s704_s17, 0  ;;  %p100_p4 = scmp.eq.s32.totalorder %s704_s17, 3 }
   0xf   : > { %p1098_p5 = por %p48_p1, %p47_p0  ;;  %p106_p6 = scmp.eq.s32.totalorder %s705_s18, 3 }
  0x10   : > { %p1104_p7 = por %p1094_p3, %p53_p2  ;;  %p1108_p8 = por %p100_p4, %p47_p0 }
  0x11   : > { %p1112_p9 = por %p106_p6, %p53_p2  ;;  %p706_p10 = scmp.ge.s32.totalorder %s1013_s16, 1 }
  0x12   : > { %s1272_s22 = scalar_select %p1104_p7, 1, 0 }
  0x13   : > { %s1273_s23 = scalar_select %p1108_p8, 1, 0 }
  0x14   : > { %s1274_s24 = scalar_select %p1112_p9, 1, 0 }
  0x15   : > { %p113_p11 = scmp.lt.s32.totalorder %s1013_s16, 5  ;;  %s1015_s26 = smov [#allocation6]  }
  0x16   : > { %1275 = sst [smem:[#allocation15_spill]] %s1274_s24  ;;  %s126_s27 = sshll.u32 %s1015_s26, 4  ;;  %s127_s27 = int_to_ptr.vmem [resolvable:$true] %s126_s27 }
  0x17   : > { %p1118_p12 = pnand %p706_p10, %p113_p11  ;;  %p762_p13 = scmp.lt.s32.totalorder %s1013_s16, 4 }
  0x18   : > { %s28_s29 = sadd.s32 1, %s1005_s14  ;;  %s870_s30 = scalar_lea.vmem %s127_s27, 64 }
  0x19   : > { %s1276_s25 = scalar_select %p1118_p12, 1, 0 }
  0x1a   : > { %p749_p0 = pneg %p1118_p12  ;;  %p1127_p1 = pnand %p762_p13, %p1098_p5 }
  0x1b   : > { %p871_p6 = scmp.ne.s32.totalorder %s127_s27, %s870_s30  ;;  %p878_p9 = scmp.lt.s32.totalorder %s127_s27, %s127_s27 }
  0x1c   : > { %p750_p2 = pnand %p749_p0, %p1094_p3  ;;  %p879_p8 = scmp.lt.s32.totalorder %s870_s30, %s870_s30 }
  0x1e   : > { %p861_p4 = pneg %p750_p2  ;;  %p880_p7 = por %p879_p8, %p878_p9 }
  0x20   : > { %p873_p10 = pnand %p871_p6, %p861_p4 }
  0x22   : > { %p874_p11 = pneg %p873_p10 }
  0x24   : > { %p881_p12 = pnand %p880_p7, %p874_p11 }
  0x26   : > { %884 = shalt.err (!%p881_p12)
}
  0x27   : > { %s1278_s1 = sld [smem:[#allocation17_spill]]  ;;  %p29_p5 = scmp.ge.s32.totalorder %s28_s29, 2 }
  0x28   : > { %s31_s5 = sadd.s32 1, %s1009_s15  ;;  %s137_s6 = sand.u32 1, %s993_s11  }
  0x29   : > { %s142_s7 = smul.u32 3, %s1005_s14  ;;  %s1297_s29 = smov (%p29_p5, %s28_s29), 0 }
  0x2a   : > { %1279 = sst [smem:[#allocation16_spill]] %s1297_s29  ;;  %s1299_s5 = smov (!%p29_p5, %s31_s5), %s1009_s15 }
  0x2b   : > { %s36_s8 = ssub.s32 %s1005_s14, %s1297_s29  ;;  %p33_p7 = scmp.ge.s32.totalorder %s1299_s5, 2 }
  0x2c   : > { %s738_s17 = smul.u32 12, %s137_s6  ;;  %s1280_s29 = sadd.s32 1, %s993_s11 }
  0x2d   : > { %752 = dma.hbm_to_vmem [thread:$0]  (!%p750_p2), %s1278_s1, 64, %s127_s27, [#allocation7]  }
  0x2e   : > { %s739_s18 = smul.u32 12, %s1009_s15  ;;  %s1301_s5 = smov (%p33_p7, %s1299_s5), 0 }
  0x2f   : > { %s35_s26 = ssub.s32 %s1009_s15, %s1301_s5  ;;  %s141_s1 = scalar_lea.vmem [#allocation3], %s738_s17 }
  0x30   : > { %s147_s21 = sadd.s32 %s739_s18, %s142_s7  ;;  %s37_s30 = sor.u32 %s36_s8, %s35_s26 }
  0x31   : > { %s709_s27 = sshll.u32 %s147_s21, 5  ;;  %p38_p8 = scmp.eq.s32.totalorder %s37_s30, 0 }
  0x32   : > { %s149_s19 = scalar_lea.hbm %s1254_s0, %s709_s27  ;;  %s150_s24 = sshll.u32 %s141_s1, 4  ;;  %s151_s24 = int_to_ptr.vmem [resolvable:$true] %s150_s24 }
  0x33   : > { %s1156_s14 = scalar_select %p38_p8, %s993_s11, %s1280_s29  }
  0x34   : > { %s138_s9 = scalar_lea.sflag [#allocation4], %s137_s6  ;;  %p887_p9 = pneg %p1127_p1 }
  0x35   : > { %s898_s16 = scalar_lea.vmem %s151_s24, 192  ;;  %s1016_s7 = smov [#allocation3]  }
  0x36   : > { %p899_p12 = scmp.ne.s32.totalorder %s151_s24, %s898_s16  ;;  %s903_s8 = sshll.u32 %s1016_s7, 4  ;;  %s904_s8 = int_to_ptr.vmem [resolvable:$false] %s903_s8 }
  0x37   : > { %s905_s18 = scalar_lea.vmem %s904_s8, 384  ;;  %p906_p2 = scmp.lt.s32.totalorder %s151_s24, %s904_s8 }
  0x38   : > { %p901_p13 = pnand %p899_p12, %p887_p9  ;;  %p907_p4 = scmp.lt.s32.totalorder %s905_s18, %s898_s16 }
  0x3a   : > { %p902_p0 = pneg %p901_p13  ;;  %p908_p6 = por %p907_p4, %p906_p2 }
  0x3c   : > { %p909_p10 = pnand %p908_p6, %p902_p0 }
  0x3e   : > { %912 = shalt.err (!%p909_p10)
}
  0x3f   : > { %s1017_s1 = smov 192   ;;  %s1018_s29 = smov 96  }
  0x40   : > { %s1019_s17 = smov 6   ;;  %p1281_p11 = scmp.ne.s32.totalorder %s1276_s25, 0 }
  0x41   : > { %756 = dma.hbm_to_vmem [thread:$0]  (!%p1127_p1), %s149_s19, 192, %s151_s24, %s138_s9, %s1017_s1, %s1018_s29, %s1019_s17  }
  0x42   : > { %162 = sbr.rel (%p1281_p11) target bundleno = 488 (0x1e8), region = 28  ;;  %s1165_s6 = sand.u32 (!%p1281_p11), 1, %s989_s10  }
  0x43   : > { %s740_s21 = smul.u32 (!%p1281_p11), 12, %s1165_s6  ;;  %s165_s16 = scalar_lea.sflag (!%p1281_p11), [#allocation4], %s1165_s6 }
  0x44   : > { %p1282_p5 = scmp.ne.s32.totalorder (!%p1281_p11), %s1272_s22, 0 }
  0x45   : > { %s168_s26 = scalar_lea.vmem (!%p1281_p11), [#allocation3], %s740_s21 }
  0x47   : > { %972 = dma.done.wait (%p1282_p5), %s165_s16, 192  }
  0x48   : > { %974 = vsyncadd (%p1282_p5), %s165_s16, 4294967104 }
  0x49   : > { %976 = dma.done.wait (%p1094_p3), [#allocation7], 64  }
  0x4a   : > { %978 = vsyncadd (%p1094_p3), [#allocation7], 4294967232  ;;  %v201_v0 = vlaneseq  ;;  %v1020_v1 = vmov 1983009808   ;;  %v714_v6 = vld [vmem:[%s168_s26 + $0x6] sm:$0x3f] }
  0x4b   : > { %v199_v2 = vunpack.c.l.s4 %v1020_v1  ;;  %v196_v7 = vld [vmem:[%s168_s26] sm:$0x3f]  ;;  %715 = vst.sshfl [vmem:[#allocation2 + $0x8] sm:$0xf pattern:$0x76325410] %v714_v6  ;;  %v342_v10 = vcombine.high %v714_v6, %v714_v6  ;;  %v324_v16 = vcombine.low %v714_v6, %v714_v6 }
  0x4c   : > { %v202_v3 = vshrl.u32 %v201_v0, 7  ;;  %713 = vst.sshfl [vmem:[#allocation2] sm:$0xf pattern:$0x76325410] %v196_v7  ;;  %s1021_s9 = smov 90   ;;  %v227_v11 = vcombine.high %v196_v7, %v196_v7  ;;  %v207_v14 = vcombine.low %v196_v7, %v196_v7 }
  0x4d   : > { %v200_v4 = vunpack.c.0.s8 %v199_v2  ;;  %s1022_s19 = smov 108   ;;  %s1023_s20 = smov 109   ;;  %v1029_v18 = vmov 0   ;;  %vm221_vm0 = vcmask 1043456   ;;  %vm308_vm1 = vcmask 736256  }
  0x4e   : > { %s1024_s22 = smov 92   ;;  %s1025_s24 = smov 91   ;;  %530 = vmatprep.mubr.bf16.mxu0 %v1029_v18  ;;  %571 = vmatprep.mubr.bf16.mxu1 %v1029_v18  ;;  %vm275_vm2 = vcmask 883712   ;;  %vm264_vm3 = vcmask 891904   ;;  %vm286_vm4 = vcmask 752640   ;;  %vm297_vm5 = vcmask 744448  }
  0x4f   : > { %v203_v5 = vsub.s32 %v200_v4, %v202_v3  ;;  %s1026_s25 = smov 127   ;;  %s1027_s28 = smov 126   ;;  %vm485_vm6 = vcmask 1041408   ;;  %vm223_vm7 = vcmask 1039360   ;;  %vm242_vm8 = vcmask 1031168  }
  0x50   : > { %s1028_s27 = smov 110   ;;  %vm253_vm9 = vcmask 900096   ;;  %vm481_vm10 = vcmask 293888   ;;  %s712_s30 = sshll.u32 %s1165_s6, 4 }
  0x51   : > { %v321_v8 = vrot.slane %v714_v6, %v203_v5  ;;  %v204_v9 = vrot.slane %v196_v7, %v203_v5  ;;  %v349_v12 = vrot.slane %v342_v10, %v203_v5  ;;  %v234_v13 = vrot.slane %v227_v11, %v203_v5  ;;  %s733_s3 = sshll.u32 %s997_s12, 1  ;;  %s734_s4 = sshll.u32 %s1001_s13, 2 }
  0x52   : > { %v214_v15 = vrot.slane %v207_v14, %v203_v5  ;;  %v331_v17 = vrot.slane %v324_v16, %v203_v5  ;;  %s603_s7 = sadd.s32 %s734_s4, %s733_s3  ;;  %s192_s18 = scalar_lea.vmem [#allocation8], %s712_s30 }
  0x53   : > { %410 = vrot.lane.b32.xlu1 %v321_v8, %s1021_s9  ;;  %301 = vrot.lane.b32.xlu0 %v204_v9, %s1021_s9  ;;  %s735_s8 = sshll.u32 %s603_s7, 7  ;;  %s607_s1 = sshll.u32 %s192_s18, 4  ;;  %s608_s1 = int_to_ptr.vmem [resolvable:$true] %s607_s1 }
  0x54   : > { %s605_s29 = scalar_lea.hbm %s1256_s2, %s735_s8  ;;  %s591_s17 = scalar_lea.sflag [#allocation5], %s1165_s6 }
  0x55   : > { %s913_s21 = scalar_lea.vmem %s608_s1, 256  ;;  %p1283_p1 = scmp.ne.s32.totalorder %s1273_s23, 0 }
  0x56   : > { %p914_p3 = scmp.ne.s32.totalorder %s608_s1, %s913_s21  ;;  %s1030_s16 = smov [#allocation8]  }
  0x57   : > { %270 = vrot.lane.b32.xlu1 %v204_v9, %s1022_s19  ;;  %257 = vrot.lane.b32.xlu0 %v204_v9, %s1023_s20  ;;  %s917_s26 = sshll.u32 %s1030_s16, 4  ;;  %s918_s26 = int_to_ptr.vmem [resolvable:$false] %s917_s26 }
  0x58   : > { %p915_p7 = pnand %p914_p3, %p1283_p1  ;;  %p920_p9 = scmp.lt.s32.totalorder %s608_s1, %s918_s26 }
  0x5a   : > { %p916_p8 = pneg %p915_p7 }
  0x5b   : > { %412 = vrot.lane.b32.xlu1 %v349_v12, %s1021_s9  ;;  %303 = vrot.lane.b32.xlu0 %v234_v13, %s1021_s9  ;;  %s919_s9 = scalar_lea.vmem %s918_s26, 512 }
  0x5c   : > { %p921_p12 = scmp.lt.s32.totalorder %s919_s9, %s913_s21 }
  0x5e   : > { %p922_p13 = por %p921_p12, %p920_p9 }
  0x5f   : > { %259 = vrot.lane.b32.xlu1 %v234_v13, %s1023_s20  ;;  %268 = vrot.lane.b32.xlu0 %v214_v15, %s1022_s19 }
  0x60   : > { %p923_p0 = pnand %p922_p13, %p916_p8 }
  0x63   : > { %281 = vrot.lane.b32.xlu1 %v234_v13, %s1024_s22  ;;  %279 = vrot.lane.b32.xlu0 %v204_v9, %s1024_s22 }
  0x67   : > { %292 = vrot.lane.b32.xlu1 %v204_v9, %s1025_s24  ;;  %290 = vrot.lane.b32.xlu0 %v214_v15, %s1025_s24 }
  0x6b   : > { %372 = vrot.lane.b32.xlu1 %v349_v12, %s1023_s20  ;;  %370 = vrot.lane.b32.xlu0 %v321_v8, %s1023_s20 }
  0x6f   : > { %382 = vrot.lane.b32.xlu1 %v321_v8, %s1022_s19  ;;  %380 = vrot.lane.b32.xlu0 %v331_v17, %s1022_s19 }
  0x73   : > { %392 = vrot.lane.b32.xlu1 %v349_v12, %s1024_s22  ;;  %390 = vrot.lane.b32.xlu0 %v321_v8, %s1024_s22 }
  0x77   : > { %402 = vrot.lane.b32.xlu1 %v321_v8, %s1025_s24  ;;  %400 = vrot.lane.b32.xlu0 %v331_v17, %s1025_s24 }
  0x7b   : > { %217 = vrot.lane.b32.xlu1 %v204_v9, %s1026_s25  ;;  %215 = vrot.lane.b32.xlu0 %v214_v15, %s1026_s25 }
  0x7f   : > { %237 = vrot.lane.b32.xlu1 %v234_v13, %s1027_s28  ;;  %235 = vrot.lane.b32.xlu0 %v204_v9, %s1027_s28 }
  0x83   : > { %248 = vrot.lane.b32.xlu1 %v204_v9, %s1028_s27  ;;  %246 = vrot.lane.b32.xlu0 %v214_v15, %s1028_s27 }
  0x87   : > { %334 = vrot.lane.b32.xlu1 %v321_v8, %s1026_s25  ;;  %332 = vrot.lane.b32.xlu0 %v331_v17, %s1026_s25 }
  0x8b   : > { %352 = vrot.lane.b32.xlu1 %v349_v12, %s1027_s28  ;;  %350 = vrot.lane.b32.xlu0 %v321_v8, %s1027_s28 }
  0x8f   : > { %362 = vrot.lane.b32.xlu1 %v321_v8, %s1028_s27  ;;  %360 = vrot.lane.b32.xlu0 %v331_v17, %s1028_s27 }
  0xc5   : > { %v411_v19 = vpop.permute.xlu1 %410  ;;  %v302_v20 = vpop.permute.xlu0 %301 }
  0xc6   : > { %v414_v25 = vrot.slane %v411_v19, 4  ;;  %v305_v26 = vrot.slane %v302_v20, 4 }
  0xc9   : > { %v271_v21 = vpop.permute.xlu1 %270  ;;  %v258_v22 = vpop.permute.xlu0 %257 }
  0xca   : > { %v273_v35 = vrot.slane %v271_v21, 4  ;;  %v261_v36 = vrot.slane %v258_v22, 4 }
  0xcd   : > { %v413_v23 = vpop.permute.xlu1 %412  ;;  %v304_v24 = vpop.permute.xlu0 %303 }
  0xce   : > { %v415_v27 = vrot.slane %v413_v23, 4  ;;  %v306_v28 = vrot.slane %v304_v24, 4 }
  0xd0   : > { %v416_v29 = vsel %vm221_vm0, %v414_v25, %v415_v27  ;;  %v307_v30 = vsel %vm221_vm0, %v305_v26, %v306_v28 }
  0xd1   : > { %v417_v31 = vsel %vm308_vm1, %v411_v19, %v416_v29  ;;  %v309_v32 = vsel %vm308_vm1, %v302_v20, %v307_v30  ;;  %v260_v33 = vpop.permute.xlu1 %259  ;;  %v269_v34 = vpop.permute.xlu0 %268 }
  0xd2   : > { %419 = vst [vmem:[#allocation2 + $0x48] sm:$0x33] %v417_v31  ;;  %311 = vst [vmem:[#allocation2 + $0x40] sm:$0x33] %v309_v32  ;;  %v262_v37 = vrot.slane %v260_v33, 4  ;;  %v272_v38 = vrot.slane %v269_v34, 4 }
  0xd4   : > { %v263_v39 = vsel %vm221_vm0, %v261_v36, %v262_v37  ;;  %v274_v40 = vsel %vm221_vm0, %v272_v38, %v273_v35 }
  0xd5   : > { %v276_v41 = vsel %vm275_vm2, %v269_v34, %v274_v40  ;;  %v282_v42 = vpop.permute.xlu1 %281  ;;  %v280_v43 = vpop.permute.xlu0 %279  ;;  %v265_v44 = vsel %vm264_vm3, %v258_v22, %v263_v39 }
  0xd6   : > { %278 = vst [vmem:[#allocation2 + $0x20] sm:$0xcc] %v276_v41  ;;  %v284_v45 = vrot.slane %v282_v42, 4  ;;  %v283_v46 = vrot.slane %v280_v43, 4  ;;  %267 = vst [vmem:[#allocation2 + $0x20] sm:$0x33] %v265_v44 }
  0xd8   : > { %v285_v47 = vsel %vm221_vm0, %v283_v46, %v284_v45 }
  0xd9   : > { %v287_v48 = vsel %vm286_vm4, %v280_v43, %v285_v47  ;;  %v293_v49 = vpop.permute.xlu1 %292  ;;  %v291_v50 = vpop.permute.xlu0 %290  ;;  %v429_v51 = vld [vmem:[#allocation2 + $0x40] sm:$0x33]  ;;  %v430_v52 = vld [vmem:[#allocation2 + $0x48] sm:$0x33] }
  0xda   : > { %289 = vst [vmem:[#allocation2 + $0x30] sm:$0x33] %v287_v48  ;;  %v295_v53 = vrot.slane %v293_v49, 4  ;;  %v294_v54 = vrot.slane %v291_v50, 4  ;;  %v725_v55 = vcombine.high %v429_v51, %v429_v51  ;;  %v727_v56 = vcombine.high %v430_v52, %v430_v52 }
  0xdb   : > { %v726_v57 = vcombine.low %v430_v52, %v430_v52  ;;  %v724_v58 = vcombine.low %v429_v51, %v429_v51 }
  0xdc   : > { %v296_v59 = vsel %vm221_vm0, %v294_v54, %v295_v53  ;;  %728 = vmatprep.subr.msk.bf16.mxu0 %vm485_vm6, %v725_v55  ;;  %730 = vmatprep.subr.msk.bf16.mxu1 %vm485_vm6, %v727_v56 }
  0xdd   : > { %v298_v60 = vsel %vm297_vm5, %v291_v50, %v296_v59  ;;  %v493_v61 = vsel %vm485_vm6, %v726_v57, 0  ;;  %v373_v62 = vpop.permute.xlu1 %372  ;;  %v487_v63 = vsel %vm485_vm6, %v724_v58, 0  ;;  %v371_v0 = vpop.permute.xlu0 %370 }
  0xde   : > { %300 = vst [vmem:[#allocation2 + $0x30] sm:$0xcc] %v298_v60  ;;  %550 = vmatpush1.bf16.msra.mxu1 %v493_v61  ;;  %v375_v1 = vrot.slane %v373_v62, 4  ;;  %509 = vmatpush1.bf16.msra.mxu0 %v487_v63  ;;  %v374_v2 = vrot.slane %v371_v0, 4 }
  0xe0   : > { %v376_v3 = vsel %vm221_vm0, %v374_v2, %v375_v1 }
  0xe1   : > { %v377_v4 = vsel %vm264_vm3, %v371_v0, %v376_v3  ;;  %v383_v5 = vpop.permute.xlu1 %382  ;;  %v381_v6 = vpop.permute.xlu0 %380  ;;  %v420_v0 = vld [vmem:[#allocation6] sm:$0xf] }
  0xe2   : > { %379 = vst [vmem:[#allocation2 + $0x28] sm:$0x33] %v377_v4  ;;  %v385_v7 = vrot.slane %v383_v5, 4  ;;  %v384_v8 = vrot.slane %v381_v6, 4 }
  0xe4   : > { %v386_v9 = vsel %vm221_vm0, %v384_v8, %v385_v7 }
  0xe5   : > { %v387_v10 = vsel %vm275_vm2, %v381_v6, %v386_v9  ;;  %v393_v11 = vpop.permute.xlu1 %392  ;;  %v391_v12 = vpop.permute.xlu0 %390  ;;  %v847_v13 = vld [vmem:[#allocation2 + $0x24] ss:$16 sps:$4 sm:$0xff]   ;;  %v849_v14 = vld [vmem:[#allocation2 + $0x20] ss:$16 sps:$4 sm:$0xff]  }
  0xe6   : > { %389 = vst [vmem:[#allocation2 + $0x28] sm:$0xcc] %v387_v10  ;;  %v395_v15 = vrot.slane %v393_v11, 4  ;;  %v394_v16 = vrot.slane %v391_v12, 4  ;;  %510 = vmatprep.subr.bf16.mxu0 %v847_v13 }
  0xe7   : > { %511 = vmatpush1.bf16.msra.mxu0 %v849_v14 }
  0xe8   : > { %v396_v17 = vsel %vm221_vm0, %v394_v16, %v395_v15 }
  0xe9   : > { %v397_v18 = vsel %vm286_vm4, %v391_v12, %v396_v17  ;;  %v403_v19 = vpop.permute.xlu1 %402  ;;  %v401_v20 = vpop.permute.xlu0 %400 }
  0xea   : > { %399 = vst [vmem:[#allocation2 + $0x38] sm:$0x33] %v397_v18  ;;  %v405_v21 = vrot.slane %v403_v19, 4  ;;  %v404_v22 = vrot.slane %v401_v20, 4 }
  0xec   : > { %v406_v23 = vsel %vm221_vm0, %v404_v22, %v405_v21 }
  0xed   : > { %v407_v24 = vsel %vm297_vm5, %v401_v20, %v406_v23  ;;  %v218_v25 = vpop.permute.xlu1 %217  ;;  %v216_v26 = vpop.permute.xlu0 %215 }
  0xee   : > { %409 = vst [vmem:[#allocation2 + $0x38] sm:$0xcc] %v407_v24  ;;  %v220_v27 = vrot.slane %v218_v25, 4  ;;  %v219_v28 = vrot.slane %v216_v26, 4 }
  0xf0   : > { %v222_v29 = vsel %vm221_vm0, %v219_v28, %v220_v27 }
  0xf1   : > { %v224_v30 = vsel %vm223_vm7, %v216_v26, %v222_v29  ;;  %v238_v31 = vpop.permute.xlu1 %237  ;;  %v236_v32 = vpop.permute.xlu0 %235 }
  0xf2   : > { %226 = vst [vmem:[#allocation2] sm:$0xcc] %v224_v30  ;;  %v240_v33 = vrot.slane %v238_v31, 4  ;;  %v239_v34 = vrot.slane %v236_v32, 4 }
  0xf4   : > { %v241_v35 = vsel %vm221_vm0, %v239_v34, %v240_v33 }
  0xf5   : > { %v243_v36 = vsel %vm242_vm8, %v236_v32, %v241_v35  ;;  %v249_v37 = vpop.permute.xlu1 %248  ;;  %v247_v38 = vpop.permute.xlu0 %246  ;;  %v850_v39 = vld [vmem:[#allocation2 + $0x2c] ss:$16 sps:$4 sm:$0xff]   ;;  %v852_v40 = vld [vmem:[#allocation2 + $0x28] ss:$16 sps:$4 sm:$0xff]  }
  0xf6   : > { %245 = vst [vmem:[#allocation2 + $0x10] sm:$0x33] %v243_v36  ;;  %v251_v41 = vrot.slane %v249_v37, 4  ;;  %v250_v42 = vrot.slane %v247_v38, 4  ;;  %551 = vmatprep.subr.bf16.mxu1 %v850_v39 }
  0xf7   : > { %552 = vmatpush1.bf16.msra.mxu1 %v852_v40 }
  0xf8   : > { %v252_v43 = vsel %vm221_vm0, %v250_v42, %v251_v41 }
  0xf9   : > { %v254_v44 = vsel %vm253_vm9, %v247_v38, %v252_v43  ;;  %v335_v45 = vpop.permute.xlu1 %334  ;;  %v333_v46 = vpop.permute.xlu0 %332 }
  0xfa   : > { %256 = vst [vmem:[#allocation2 + $0x10] sm:$0xcc] %v254_v44  ;;  %v337_v47 = vrot.slane %v335_v45, 4  ;;  %v336_v48 = vrot.slane %v333_v46, 4 }
  0xfc   : > { %v338_v49 = vsel %vm221_vm0, %v336_v48, %v337_v47 }
  0xfd   : > { %v339_v50 = vsel %vm223_vm7, %v333_v46, %v338_v49  ;;  %v353_v51 = vpop.permute.xlu1 %352  ;;  %v351_v52 = vpop.permute.xlu0 %350 }
  0xfe   : > { %341 = vst [vmem:[#allocation2 + $0x8] sm:$0xcc] %v339_v50  ;;  %v355_v53 = vrot.slane %v353_v51, 4  ;;  %v354_v54 = vrot.slane %v351_v52, 4 }
 0x100   : > { %v356_v55 = vsel %vm221_vm0, %v354_v54, %v355_v53 }
 0x101   : > { %v357_v56 = vsel %vm242_vm8, %v351_v52, %v356_v55  ;;  %v363_v57 = vpop.permute.xlu1 %362  ;;  %v361_v58 = vpop.permute.xlu0 %360  ;;  %v853_v59 = vld [vmem:[#allocation2 + $0x4] ss:$16 sps:$4 sm:$0xff]   ;;  %v855_v60 = vld [vmem:[#allocation2] ss:$16 sps:$4 sm:$0xff]  }
 0x102   : > { %359 = vst [vmem:[#allocation2 + $0x18] sm:$0x33] %v357_v56  ;;  %v365_v61 = vrot.slane %v363_v57, 4  ;;  %v364_v62 = vrot.slane %v361_v58, 4  ;;  %512 = vmatprep.subr.bf16.mxu0 %v853_v59 }
 0x103   : > { %513 = vmatpush1.bf16.msra.mxu0 %v855_v60 }
 0x104   : > { %v366_v63 = vsel %vm221_vm0, %v364_v62, %v365_v61 }
 0x105   : > { %v367_v1 = vsel %vm253_vm9, %v361_v58, %v366_v63 }
 0x106   : > { %369 = vst [vmem:[#allocation2 + $0x18] sm:$0xcc] %v367_v1  ;;  %729 = vmatmul.mubr.msk.bf16.vlgmr.msra.gmra.mxu0 %vm481_vm10, %v420_v0 }
 0x10d   : > { %v856_v2 = vld [vmem:[#allocation2 + $0xc] ss:$16 sps:$4 sm:$0xff]   ;;  %v858_v3 = vld [vmem:[#allocation2 + $0x8] ss:$16 sps:$4 sm:$0xff]  }
 0x10e   : > { %553 = vmatprep.subr.bf16.mxu1 %v856_v2 }
 0x10f   : > { %554 = vmatpush1.bf16.msra.mxu1 %v858_v3 }
 0x112   : > { %731 = vmatmul.mubr.msk.bf16.vlgmr.msra.gmra.mxu1 %vm481_vm10, %v420_v0 }
 0x1c6   : > { %v532_v4 = vpop.f32.mrf.mxu0 }
 0x1c7   : > { %v580_v8 = vmax.f32 %v532_v4, 0.0 }
 0x1c8   : > { %v534_v5 = vpop.f32.mrf.mxu0 }
 0x1c9   : > { %v581_v12 = vmax.f32 %v534_v5, 0.0 }
 0x1ca   : > { %v536_v6 = vpop.f32.mrf.mxu0 }
 0x1cc   : > { %v537_v7 = vpop.f32.mrf.mxu0 }
 0x1d2   : > { %v573_v9 = vpop.f32.mrf.mxu1 }
 0x1d3   : > { %v582_v10 = vmax.f32 %v573_v9, 0.0 }
 0x1d4   : > { %v575_v11 = vpop.f32.mrf.mxu1 }
 0x1d5   : > { %v584_v13 = vsub.f32 %v580_v8, %v582_v10  ;;  %v583_v14 = vmax.f32 %v575_v11, 0.0 }
 0x1d6   : > { %v577_v15 = vpop.f32.mrf.mxu1 }
 0x1d7   : > { %v586_v16 = vand.u32 2147483647, %v584_v13  ;;  %v585_v17 = vsub.f32 %v581_v12, %v583_v14 }
 0x1d8   : > { %v578_v18 = vpop.f32.mrf.mxu1 }
 0x1d9   : > { %588 = vst [vmem:[%s192_s18] sm:$0xff] %v586_v16  ;;  %v587_v19 = vand.u32 2147483647, %v585_v17 }
 0x1db   : > { %589 = vst [vmem:[%s192_s18 + $0x8] sm:$0xff] %v587_v19 }
 0x1dc   : > { %926 = shalt.err (!%p923_p0)
}
 0x1dd   : > { %s927_s19 = scalar_lea.hbm %s605_s29, 256  ;;  %s931_s22 = scalar_lea.hbm %s1256_s2, 1024 }
 0x1de   : > { %p928_p2 = scmp.ne.s32.totalorder %s605_s29, %s927_s19  ;;  %p932_p10 = scmp.lt.s32.totalorder %s605_s29, %s1256_s2 }
 0x1df   : > { %p933_p11 = scmp.lt.s32.totalorder %s931_s22, %s927_s19 }
 0x1e0   : > { %p929_p4 = pnand %p928_p2, %p1283_p1 }
 0x1e1   : > { %p934_p5 = por %p933_p11, %p932_p10 }
 0x1e2   : > { %p930_p6 = pneg %p929_p4 }
 0x1e4   : > { %p935_p3 = pnand %p934_p5, %p930_p6 }
 0x1e6   : > { %938 = shalt.err (!%p935_p3)
}
 0x1e7   : > { %747 = dma.vmem_to_hbm [thread:$0]  (%p1283_p1), %s608_s1, 256, %s605_s29, %s591_s17  }
 0x1e8 PF: > { %s1284_s28 = sld [smem:[#allocation14_spill]] }
 0x1e9   : > { %s1285_s27 = sld [smem:[#allocation12_spill]] }
 0x1ea   : > { %s1286_s30 = sld [smem:[#allocation15_spill]] }
 0x1ee   : > { %p764_p7 = scmp.ge.s32.totalorder %s1284_s28, 2 }
 0x1ef   : > { %s619_s3 = sand.u32 1, %s1285_s27  }
 0x1f0   : > { %p1287_p8 = scmp.ne.s32.totalorder %s1286_s30, 0  ;;  %s620_s4 = scalar_lea.sflag [#allocation5], %s619_s3 }
 0x1f2   : > { %p758_p9 = pnand %p764_p7, %p1287_p8 }
 0x1f4   : > { %p759_p12 = pneg %p758_p9 }
 0x1f6   : > { %980 = dma.done.wait (%p759_p12), %s620_s4, 256  }
 0x1f7   : > { %982 = vsyncadd (%p759_p12), %s620_s4, 4294967040  ;;  %s19_s16 = sadd.s32 1, %s1284_s28   ;;  %s1288_s12 = sld [smem:[#allocation13_spill]] }
 0x1f8   : > { %p16_p13 = scmp.ge.s32.totalorder %s19_s16, 6   ;;  %s1289_s23 = sld [smem:[#allocation16_spill]] }
 0x1f9   : > { %s1290_s9 = smov %s989_s10  ;;  %s1291_s10 = smov %s993_s11 }
 0x1fa   : > { %s1292_s11 = smov %s1156_s14  ;;  %s1293_s13 = smov %s1009_s15 }
 0x1fb   : > { %s1295_s15 = smov %s1301_s5  ;;  %18 = sbr.rel (!%p16_p13) target bundleno = 10 (0xa), region = 78 }
 0x1fe   : > { %s1294_s14 = smov %s1289_s23 }
 0x200   :  { %625 = vsyncpa [#allocation4], 1 }
 0x201   :  { %627 = vsyncpa [#allocation4 + $0x1], 1 }
 0x202   :  { %628 = vsyncpa [#allocation7], 1 }
 0x203   :  { %629 = vsyncpa [#allocation5], 1 }
 0x204   :  { %631 = vsyncpa [#allocation5 + $0x1], 1 }

</bundles_post_ra>
